<compile_context>
chip_gen: v7x
topology: tpu7x:2x2x1
jax: 0.10.0
libtpu: 0.0.40
codegen_flags: <defaults>
</compile_context>

<pallas_src>
import functools

import jax
import jax.numpy as jnp
from jax.experimental import pallas as pl
from jax.experimental.pallas import tpu as pltpu


_LANES = 128
_TARGET_BLOCK_BYTES = 8 * 1024 * 1024   # ~8 MiB input tile; x2 for double-buffering
_VMEM_LIMIT_BYTES = 32 * 1024 * 1024    # raise v5e's 16 MiB scoped default; safe on all gens
_ACC_ROWS = 64                          # 8 independent (8,128) f32 accumulation chains


def _num_parts():
    """2 on chips with two TensorCores per Pallas device (v4/v5p megacore, v7x), else 1."""
    try:
        kind = jax.devices()[0].device_kind.lower()
    except Exception:
        return 1
    if ("v4" in kind) or ("v5p" in kind) or ("v7" in kind) or ("7x" in kind):
        return 2
    return 1


def _partial_sum_kernel(x_ref, o_ref, *, block_rows, acc_rows, chunks_per_part,
                        nblocks, last_rows):
    c = pl.program_id(0)   # core / partition axis ("parallel")
    j = pl.program_id(1)   # chunk axis ("arbitrary", reduction)
    g = c * chunks_per_part + j   # global chunk index

    @pl.when(j == 0)
    def _():
        o_ref[...] = jnp.zeros_like(o_ref)

    # Steady state: full blocks, no mask. Reduce over the major axis only
    # (pure vreg adds) into acc_rows//8 independent chains so the dependent-add
    # latency hides under the DMA on all generations.
    @pl.when(g < nblocks - 1)
    def _():
        tile = x_ref[...].astype(jnp.float32)
        o_ref[...] += tile.reshape(
            block_rows // acc_rows, acc_rows, _LANES).sum(axis=0, keepdims=True)

    # Last chunk (possibly ragged). The valid row count is a trace-time
    # constant and a multiple of 8, so a static prefix slice suffices:
    # no iota, no select. Overrun chunks (g > nblocks-1, DMA index clamped)
    # simply contribute nothing.
    @pl.when(g == nblocks - 1)
    def _():
        tile = x_ref[0:last_rows, :].astype(jnp.float32)
        o_ref[:, 0:8, :] += tile.reshape(
            last_rows // 8, 8, _LANES).sum(axis=0, keepdims=True)


def l1_loss(x):
    """loss = sum_i mean(x[i]) == sum(x) / (elements per sample)."""
    b = x.shape[0]
    total = 1
    for d in x.shape:
        total *= d
    n_per_sample = total // b
    inv_n = 1.0 / float(n_per_sample)
    itemsize = jnp.dtype(x.dtype).itemsize

    x_flat = x.reshape(-1)              # metadata-only reshape, native dtype

    rows = total // _LANES
    rows_k = (rows // 8) * 8            # rows handled by the kernel (multiple of 8)
    main = rows_k * _LANES

    # Ragged tail (< 1024 elements) summed in plain JAX; for typical conv
    # feature maps this path is skipped entirely.
    tail_sum = jnp.float32(0.0)
    if main < total:
        tail_sum = jnp.sum(x_flat[main:].astype(jnp.float32))
    if rows_k == 0:
        return tail_sum * inv_n

    x2 = x_flat[:main].reshape(rows_k, _LANES)

    block_rows = _TARGET_BLOCK_BYTES // (_LANES * itemsize)
    block_rows = max(8, (block_rows // 8) * 8)
    block_rows = min(block_rows, rows_k)            # multiple of 8, capped to input
    nblocks = pl.cdiv(rows_k, block_rows)

    parts = _num_parts()
    if nblocks < 2:
        parts = 1
    chunks_per_part = pl.cdiv(nblocks, parts)

    acc_rows = _ACC_ROWS if block_rows % _ACC_ROWS == 0 else 8
    last_rows = rows_k - (nblocks - 1) * block_rows   # multiple of 8, >= 8

    kernel = functools.partial(
        _partial_sum_kernel,
        block_rows=block_rows, acc_rows=acc_rows, chunks_per_part=chunks_per_part,
        nblocks=nblocks, last_rows=last_rows)

    def in_index_map(c, j):
        # Clamp so the DMA window never starts past the array end; overrun
        # chunks revisit the last block (same index -> no re-fetch) and are
        # skipped inside the kernel.
        return (jnp.minimum(c * chunks_per_part + j, nblocks - 1), 0)

    partials = pl.pallas_call(
        kernel,
        out_shape=jax.ShapeDtypeStruct((parts, acc_rows, _LANES), jnp.float32),
        grid_spec=pltpu.PrefetchScalarGridSpec(
            num_scalar_prefetch=0,
            grid=(parts, chunks_per_part),
            in_specs=[pl.BlockSpec((block_rows, _LANES), in_index_map)],
            out_specs=pl.BlockSpec((1, acc_rows, _LANES), lambda c, j: (c, 0, 0)),
        ),
        compiler_params=pltpu.CompilerParams(
            dimension_semantics=("parallel", "arbitrary"),
            vmem_limit_bytes=_VMEM_LIMIT_BYTES),
        cost_estimate=pl.CostEstimate(
            flops=total, transcendentals=0, bytes_accessed=total * itemsize),
    )(x2)

    return (jnp.sum(partials) + tail_sum) * inv_n


def _reference(x):
    # Pure-JAX reference mirroring the PyTorch loop.
    loss = 0.0
    for i in range(x.shape[0]):
        loss = loss + jnp.mean(x[i])
    return loss


if __name__ == "__main__":
    key = jax.random.PRNGKey(0)
    # Small NCHW input consistent with a conv-net feature map.
    x = jax.random.normal(key, (2, 4, 16, 16), dtype=jnp.float32)

    loss = jax.jit(l1_loss)(x)
    jax.block_until_ready(loss)

    ref = _reference(x)
    assert jnp.allclose(loss, ref, atol=1e-5, rtol=1e-5), (loss, ref)
    print("KERNEL_OK")
</pallas_src>

<mosaic_0001>
module attributes {stable_mosaic.version = 11 : i64} {
  func.func @_partial_sum_kernel(%arg0: i32, %arg1: i32, %arg2: memref<16x128xf32, #tpu.memory_space<vmem>>, %arg3: memref<1x8x128xf32, #tpu.memory_space<vmem>>) attributes {dimension_semantics = [#tpu.dimension_semantics<parallel>, #tpu.dimension_semantics<arbitrary>], iteration_bounds = array<i64: 1, 1>, scalar_prefetch = 0 : i64, scratch_operands = 0 : i64, tpu.core_type = #tpu.core_type<tc>, window_params = [{transform_indices = @transform_0, window_bounds = array<i64: 16, 128>}, {transform_indices = @transform_1, window_bounds = array<i64: 1, 8, 128>}]} {
    %c1_i32 = arith.constant 1 : i32
    %0 = arith.muli %arg0, %c1_i32 : i32
    %1 = arith.addi %0, %arg1 : i32
    %c0_i32 = arith.constant 0 : i32
    %2 = arith.cmpi eq, %arg1, %c0_i32 : i32
    %3 = arith.extui %2 : i1 to i32
    %c0_i32_0 = arith.constant 0 : i32
    %4 = arith.cmpi ne, %3, %c0_i32_0 : i32
    scf.if %4 {
      %cst = arith.constant 0.000000e+00 : f32
      %11 = vector.broadcast %cst : f32 to vector<1x8x128xf32>
      %c0 = arith.constant 0 : index
      %c0_5 = arith.constant 0 : index
      %c0_6 = arith.constant 0 : index
      %12 = vector.load %arg3[%c0, %c0_5, %c0_6] : memref<1x8x128xf32, #tpu.memory_space<vmem>>, vector<1x8x128xf32>
      tpu.vector_store %arg3[%c0, %c0_5, %c0_6], %11 {strides = array<i32>} : memref<1x8x128xf32, #tpu.memory_space<vmem>>, vector<1x8x128xf32>,
    } else {
    }
    %c0_i32_1 = arith.constant 0 : i32
    %5 = arith.cmpi slt, %1, %c0_i32_1 : i32
    %6 = arith.extui %5 : i1 to i32
    %c0_i32_2 = arith.constant 0 : i32
    %7 = arith.cmpi ne, %6, %c0_i32_2 : i32
    scf.if %7 {
      %c0 = arith.constant 0 : index
      %c0_5 = arith.constant 0 : index
      %11 = vector.load %arg2[%c0, %c0_5] : memref<16x128xf32, #tpu.memory_space<vmem>>, vector<16x128xf32>
      %c0_6 = arith.constant 0 : index
      %c0_7 = arith.constant 0 : index
      %c0_8 = arith.constant 0 : index
      %12 = vector.load %arg3[%c0_6, %c0_7, %c0_8] : memref<1x8x128xf32, #tpu.memory_space<vmem>>, vector<1x8x128xf32>
      %13 = vector.shape_cast %11 : vector<16x128xf32> to vector<2x8x128xf32>
      %cst = arith.constant dense<0.000000e+00> : vector<8x128xf32>
      %14 = vector.multi_reduction <add>, %13, %cst [0] : vector<2x8x128xf32> to vector<8x128xf32>
      %15 = vector.shape_cast %14 : vector<8x128xf32> to vector<1x8x128xf32>
      %16 = arith.addf %12, %15 : vector<1x8x128xf32>
      %c0_9 = arith.constant 0 : index
      %c0_10 = arith.constant 0 : index
      %c0_11 = arith.constant 0 : index
      %17 = vector.load %arg3[%c0_9, %c0_10, %c0_11] : memref<1x8x128xf32, #tpu.memory_space<vmem>>, vector<1x8x128xf32>
      tpu.vector_store %arg3[%c0_9, %c0_10, %c0_11], %16 {strides = array<i32>} : memref<1x8x128xf32, #tpu.memory_space<vmem>>, vector<1x8x128xf32>,
    } else {
    }
    %c0_i32_3 = arith.constant 0 : i32
    %8 = arith.cmpi eq, %1, %c0_i32_3 : i32
    %9 = arith.extui %8 : i1 to i32
    %c0_i32_4 = arith.constant 0 : i32
    %10 = arith.cmpi ne, %9, %c0_i32_4 : i32
    scf.if %10 {
      %c0 = arith.constant 0 : index
      %c0_5 = arith.constant 0 : index
      %11 = vector.load %arg2[%c0, %c0_5] : memref<16x128xf32, #tpu.memory_space<vmem>>, vector<16x128xf32>
      %c0_6 = arith.constant 0 : index
      %c0_7 = arith.constant 0 : index
      %c0_8 = arith.constant 0 : index
      %12 = vector.load %arg3[%c0_6, %c0_7, %c0_8] : memref<1x8x128xf32, #tpu.memory_space<vmem>>, vector<1x8x128xf32>
      %13 = vector.shape_cast %11 : vector<16x128xf32> to vector<2x8x128xf32>
      %cst = arith.constant dense<0.000000e+00> : vector<8x128xf32>
      %14 = vector.multi_reduction <add>, %13, %cst [0] : vector<2x8x128xf32> to vector<8x128xf32>
      %15 = vector.shape_cast %14 : vector<8x128xf32> to vector<1x8x128xf32>
      %16 = arith.addf %12, %15 : vector<1x8x128xf32>
      %c0_9 = arith.constant 0 : index
      %c0_10 = arith.constant 0 : index
      %c0_11 = arith.constant 0 : index
      %17 = vector.load %arg3[%c0_9, %c0_10, %c0_11] : memref<1x8x128xf32, #tpu.memory_space<vmem>>, vector<1x8x128xf32>
      tpu.vector_store %arg3[%c0_9, %c0_10, %c0_11], %16 {strides = array<i32>} : memref<1x8x128xf32, #tpu.memory_space<vmem>>, vector<1x8x128xf32>,
    } else {
    }
    return
  }
  func.func @transform_0(%arg0: i32, %arg1: i32) -> (i32, i32) {
    %c1_i32 = arith.constant 1 : i32
    %0 = arith.muli %arg0, %c1_i32 : i32
    %1 = arith.addi %0, %arg1 : i32
    %c0_i32 = arith.constant 0 : i32
    %2 = arith.minsi %1, %c0_i32 : i32
    %c0_i32_0 = arith.constant 0 : i32
    %c0_i32_1 = arith.constant 0 : i32
    return %2, %c0_i32_0 : i32, i32
  }
  func.func @transform_1(%arg0: i32, %arg1: i32) -> (i32, i32, i32) {
    %c0_i32 = arith.constant 0 : i32
    %c0_i32_0 = arith.constant 0 : i32
    %c0_i32_1 = arith.constant 0 : i32
    return %arg0, %c0_i32, %c0_i32_0 : i32, i32, i32
  }
}

</mosaic_0001>

<bundles_post_ra>
// kernel: l1_loss.1
= control target key start
LH: loop header
LB: loop body
LE: loop exit
PB: predicated region body
PF: predicated region fallthrough
CT: control target
= control target key end

     0   :  { %s96_s0 = inlined_call_operand.vmem [shape: f32[16,128], index: 0, kind: input, shape index: {}]   ;;  %s97_s1 = inlined_call_operand.vmem [shape: f32[1,8,128], index: 1, kind: output, shape index: {}]  }
   0x1   :  { %v60_v0 = vld [vmem:[%s96_s0] sm:$0xff]  ;;  %v61_v1 = vld [vmem:[%s96_s0 + $0x8] sm:$0xff] }
   0x2   :  { %v63_v2 = vadd.f32 %v61_v1, %v60_v0 }
   0x4   :  { %65 = vst [vmem:[%s97_s1] sm:$0xff] %v63_v2 }

</bundles_post_ra>
